<compile_context>
chip_gen: v6e
topology: v6e:2x2x1
jax: 0.10.0
libtpu: 0.0.40
codegen_flags: <defaults>
</compile_context>

<pallas_src>
import functools
import jax
import jax.numpy as jnp
from jax.experimental import pallas as pl
from jax.experimental.pallas import tpu as pltpu


def _msconv_kernel(x_ref, w_ref, scale_ref, bias_ref, o_ref, *, tile_l, use_im2col):
    """One (sample, L-tile) grid step.

    x_ref  : (1, 1, C_in, tile_l + 6) bf16   NCL tile with a 3-column halo each side
    w_ref  : (3*C_out, 7*C_in) bf16          if use_im2col
             (7, 3*C_out, C_in) bf16         otherwise (per-tap matmul loop)
    scale_ref, bias_ref : (3*C_out, 1) f32   fused conv-bias + BatchNorm(eval) affine
    o_ref  : (1, 3*C_out, tile_l) f32        NCL output tile
    """
    x = x_ref[0, 0]                                        # (C_in, tile_l + 6) bf16

    if use_im2col:
        # Stack the 7 shifted views along sublanes -> single MXU matmul with K = 7*C_in.
        slab = jnp.concatenate([x[:, k:k + tile_l] for k in range(7)], axis=0)
        acc = jnp.dot(w_ref[...], slab, preferred_element_type=jnp.float32)
    else:
        c3 = w_ref.shape[1]
        acc = jnp.zeros((c3, tile_l), jnp.float32)
        for k in range(7):                                 # static, unrolled taps
            acc = acc + jnp.dot(w_ref[k], x[:, k:k + tile_l],
                                preferred_element_type=jnp.float32)

    # f32 epilogue: fused conv-bias + BatchNorm (eval) affine, then ReLU.
    y = acc * scale_ref[...] + bias_ref[...]               # (3*C_out, tile_l)
    o_ref[0] = jnp.maximum(y, 0.0).astype(o_ref.dtype)


def _choose_tile_l(L, c_in, c3, bytes_budget=8 << 20):
    """Largest L tile (multiple of 128 that divides L) whose double-buffered
    input + output footprint stays within a conservative VMEM budget
    (fits the 16 MiB scoped default on v5e and leaves headroom on v7x)."""
    if L <= 512 or L % 128 != 0:
        return L
    per_col = c_in * 2 + c3 * 4                 # bf16 input + f32 output bytes per column
    max_tl = (bytes_budget // (2 * per_col)) // 128 * 128
    if max_tl >= L:
        return L
    tl = max(128, max_tl)
    while tl > 128 and L % tl != 0:
        tl -= 128
    return tl if L % tl == 0 else L


def multi_scale_conv(x_ncl, params):
    """x_ncl: (N, C_in, L) f32. Returns (N, 3*C_out, L) f32 (matches torch.cat on dim 1)."""
    N, C_in, L = x_ncl.shape
    C_out = params["w3"].shape[0]               # PyTorch layout (C_out, C_in, K)
    C3 = 3 * C_out

    # --- fuse the 3 branches into one zero-padded 7-tap weight: Wf[k] pairs with x_pad[:, j+k]
    w_full = jnp.zeros((7, C3, C_in), jnp.float32)
    w_full = w_full.at[2:5, 0:C_out].set(jnp.transpose(params["w3"], (2, 0, 1)))
    w_full = w_full.at[1:6, C_out:2 * C_out].set(jnp.transpose(params["w5"], (2, 0, 1)))
    w_full = w_full.at[0:7, 2 * C_out:].set(jnp.transpose(params["w7"], (2, 0, 1)))

    use_im2col = C_in <= 64                     # raise the MXU contraction dim when C_in is small
    if use_im2col:
        # W_flat[o, k*C_in + c] = w_full[k, o, c]  (matches the slab row order in the kernel)
        w = jnp.transpose(w_full, (1, 0, 2)).reshape(C3, 7 * C_in)
    else:
        w = w_full
    w = w.astype(jnp.bfloat16)

    # --- fold conv bias + BatchNorm(eval, running stats) into a per-channel affine ---
    eps = 1e-5
    scales, biases = [], []
    for i, k in enumerate((3, 5, 7)):
        g, be = params[f"bn{i+1}_gamma"], params[f"bn{i+1}_beta"]
        mu, var = params[f"bn{i+1}_mean"], params[f"bn{i+1}_var"]
        cb = params[f"b{k}"]
        s = g / jnp.sqrt(var + eps)
        scales.append(s)
        biases.append((cb - mu) * s + be)
    scale = jnp.concatenate(scales).reshape(C3, 1).astype(jnp.float32)
    bias = jnp.concatenate(biases).reshape(C3, 1).astype(jnp.float32)

    # --- stage input: keep NCL (no transposes), pad L by 3 each side, pre-slice halo'd tiles
    tile_l = _choose_tile_l(L, C_in, C3)
    num_t = L // tile_l
    x_pad = jnp.pad(x_ncl.astype(jnp.bfloat16), ((0, 0), (0, 0), (3, 3)))   # (N, C_in, L+6)
    if num_t == 1:
        x_tiles = x_pad[:, None]                                            # (N, 1, C_in, L+6)
    else:
        x_tiles = jnp.stack(
            [x_pad[:, :, t * tile_l: t * tile_l + tile_l + 6] for t in range(num_t)],
            axis=1)                                                          # (N, T, C_in, TL+6)

    kernel = functools.partial(_msconv_kernel, tile_l=tile_l, use_im2col=use_im2col)
    w_ndim = w.ndim

    out = pl.pallas_call(
        kernel,
        out_shape=jax.ShapeDtypeStruct((N, C3, L), jnp.float32),
        grid_spec=pltpu.PrefetchScalarGridSpec(
            num_scalar_prefetch=0,
            grid=(N, num_t),
            in_specs=[
                pl.BlockSpec((1, 1, C_in, tile_l + 6), lambda n, t: (n, t, 0, 0)),
                pl.BlockSpec(w.shape, lambda n, t: (0,) * w_ndim),
                pl.BlockSpec((C3, 1), lambda n, t: (0, 0)),
                pl.BlockSpec((C3, 1), lambda n, t: (0, 0)),
            ],
            out_specs=pl.BlockSpec((1, C3, tile_l), lambda n, t: (n, 0, t)),
        ),
        compiler_params=pltpu.CompilerParams(
            dimension_semantics=("parallel", "parallel")),
    )(x_tiles, w, scale, bias)

    return out                                   # already NCL: (N, 3*C_out, L)


def _reference(x_ncl, params):
    """Plain-JAX f32 reference (conv1d + BN eval + ReLU, concat on channels)."""
    eps = 1e-5
    outs = []
    for i, (k, pad) in enumerate([(3, 1), (5, 2), (7, 3)]):
        w = params[f"w{k}"]
        cb = params[f"b{k}"]
        y = jax.lax.conv_general_dilated(
            x_ncl, w, window_strides=(1,), padding=[(pad, pad)],
            dimension_numbers=("NCH", "OIH", "NCH"))
        y = y + cb[None, :, None]
        g = params[f"bn{i+1}_gamma"]; be = params[f"bn{i+1}_beta"]
        mu = params[f"bn{i+1}_mean"]; var = params[f"bn{i+1}_var"]
        y = (y - mu[None, :, None]) / jnp.sqrt(var[None, :, None] + eps)
        y = y * g[None, :, None] + be[None, :, None]
        outs.append(jnp.maximum(y, 0.0))
    return jnp.concatenate(outs, axis=1)


def init_params(key, in_channel, out_channel):
    ks = jax.random.split(key, 10)
    p = {}
    for i, k in enumerate((3, 5, 7)):
        fan_in = in_channel * k
        bound = 1.0 / jnp.sqrt(fan_in)
        p[f"w{k}"] = jax.random.uniform(ks[2 * i], (out_channel, in_channel, k),
                                        jnp.float32, -bound, bound)
        p[f"b{k}"] = jax.random.uniform(ks[2 * i + 1], (out_channel,),
                                        jnp.float32, -bound, bound)
    # BatchNorm1d (eval mode, running stats): nontrivial deterministic values
    for i in range(3):
        kk = jax.random.split(ks[6 + i], 4)
        p[f"bn{i+1}_gamma"] = 1.0 + 0.1 * jax.random.normal(kk[0], (out_channel,), jnp.float32)
        p[f"bn{i+1}_beta"] = 0.1 * jax.random.normal(kk[1], (out_channel,), jnp.float32)
        p[f"bn{i+1}_mean"] = 0.1 * jax.random.normal(kk[2], (out_channel,), jnp.float32)
        p[f"bn{i+1}_var"] = 1.0 + 0.5 * jax.random.uniform(kk[3], (out_channel,), jnp.float32)
    return p


if __name__ == "__main__":
    N, C_in, L, C_out = 2, 4, 16, 8
    key = jax.random.PRNGKey(0)
    kx, kp = jax.random.split(key)
    x = jax.random.normal(kx, (N, C_in, L), jnp.float32)     # PyTorch NCL input
    params = init_params(kp, C_in, C_out)

    out = multi_scale_conv(x, params)
    out = jax.block_until_ready(out)

    ref = _reference(x, params)
    assert out.shape == (N, 3 * C_out, L), out.shape
    # bf16 matmul inputs (per perf review) -> relaxed tolerance vs the pure-f32 reference.
    assert jnp.allclose(out, ref, rtol=5e-2, atol=5e-2), float(jnp.max(jnp.abs(out - ref)))
    print("KERNEL_OK")
</pallas_src>

<mosaic_0001>
module attributes {stable_mosaic.version = 11 : i64} {
  func.func @_msconv_kernel(%arg0: i32, %arg1: i32, %arg2: memref<1x1x4x22xbf16, #tpu.memory_space<vmem>>, %arg3: memref<24x28xbf16, #tpu.memory_space<vmem>>, %arg4: memref<24x1xf32, #tpu.memory_space<vmem>>, %arg5: memref<24x1xf32, #tpu.memory_space<vmem>>, %arg6: memref<1x24x16xf32, #tpu.memory_space<vmem>>) attributes {dimension_semantics = [#tpu.dimension_semantics<parallel>, #tpu.dimension_semantics<parallel>], iteration_bounds = array<i64: 2, 1>, scalar_prefetch = 0 : i64, scratch_operands = 0 : i64, tpu.core_type = #tpu.core_type<tc>, window_params = [{transform_indices = @transform_0, window_bounds = array<i64: 1, 1, 4, 22>}, {pipeline_mode = #tpu.pipeline_mode<synchronous>, transform_indices = @transform_1, window_bounds = array<i64: 24, 28>}, {pipeline_mode = #tpu.pipeline_mode<synchronous>, transform_indices = @transform_2, window_bounds = array<i64: 24, 1>}, {pipeline_mode = #tpu.pipeline_mode<synchronous>, transform_indices = @transform_3, window_bounds = array<i64: 24, 1>}, {transform_indices = @transform_4, window_bounds = array<i64: 1, 24, 16>}]} {
    %c0 = arith.constant 0 : index
    %c0_0 = arith.constant 0 : index
    %c0_1 = arith.constant 0 : index
    %c0_2 = arith.constant 0 : index
    %0 = vector.load %arg2[%c0, %c0_0, %c0_1, %c0_2] : memref<1x1x4x22xbf16, #tpu.memory_space<vmem>>, vector<1x1x4x22xbf16>
    %1 = vector.shape_cast %0 : vector<1x1x4x22xbf16> to vector<4x22xbf16>
    %2 = vector.extract_strided_slice %1 {offsets = [0, 0], sizes = [4, 16], strides = [1, 1]} : vector<4x22xbf16> to vector<4x16xbf16>
    %3 = vector.extract_strided_slice %1 {offsets = [0, 1], sizes = [4, 16], strides = [1, 1]} : vector<4x22xbf16> to vector<4x16xbf16>
    %4 = vector.extract_strided_slice %1 {offsets = [0, 2], sizes = [4, 16], strides = [1, 1]} : vector<4x22xbf16> to vector<4x16xbf16>
    %5 = vector.extract_strided_slice %1 {offsets = [0, 3], sizes = [4, 16], strides = [1, 1]} : vector<4x22xbf16> to vector<4x16xbf16>
    %6 = vector.extract_strided_slice %1 {offsets = [0, 4], sizes = [4, 16], strides = [1, 1]} : vector<4x22xbf16> to vector<4x16xbf16>
    %7 = vector.extract_strided_slice %1 {offsets = [0, 5], sizes = [4, 16], strides = [1, 1]} : vector<4x22xbf16> to vector<4x16xbf16>
    %8 = vector.extract_strided_slice %1 {offsets = [0, 6], sizes = [4, 16], strides = [1, 1]} : vector<4x22xbf16> to vector<4x16xbf16>
    %9 = tpu.concatenate %2, %3, %4, %5, %6, %7, %8 in 0 : vector<4x16xbf16>, vector<4x16xbf16>, vector<4x16xbf16>, vector<4x16xbf16>, vector<4x16xbf16>, vector<4x16xbf16>, vector<4x16xbf16> -> vector<28x16xbf16>
    %c0_3 = arith.constant 0 : index
    %c0_4 = arith.constant 0 : index
    %10 = vector.load %arg3[%c0_3, %c0_4] : memref<24x28xbf16, #tpu.memory_space<vmem>>, vector<24x28xbf16>
    %cst = arith.constant dense<0.000000e+00> : vector<24x16xf32>
    %11 = tpu.matmul %10, %9, %cst {dimension_numbers = #tpu.dot_dimension_numbers<[1], [0], [0], [1], [0, 0, 1, 1], [], []>} : vector<24x28xbf16>, vector<28x16xbf16>, vector<24x16xf32> -> vector<24x16xf32>
    %c0_5 = arith.constant 0 : index
    %c0_6 = arith.constant 0 : index
    %12 = vector.load %arg4[%c0_5, %c0_6] : memref<24x1xf32, #tpu.memory_space<vmem>>, vector<24x1xf32>
    %13 = vector.broadcast %12 : vector<24x1xf32> to vector<24x16xf32>
    %14 = arith.mulf %11, %13 : vector<24x16xf32>
    %c0_7 = arith.constant 0 : index
    %c0_8 = arith.constant 0 : index
    %15 = vector.load %arg5[%c0_7, %c0_8] : memref<24x1xf32, #tpu.memory_space<vmem>>, vector<24x1xf32>
    %16 = vector.broadcast %15 : vector<24x1xf32> to vector<24x16xf32>
    %17 = arith.addf %14, %16 : vector<24x16xf32>
    %cst_9 = arith.constant 0.000000e+00 : f32
    %18 = vector.broadcast %cst_9 : f32 to vector<24x16xf32>
    %19 = arith.maximumf %17, %18 : vector<24x16xf32>
    %c0_10 = arith.constant 0 : index
    %c0_11 = arith.constant 0 : index
    %c0_12 = arith.constant 0 : index
    %20 = vector.load %arg6[%c0_10, %c0_11, %c0_12] : memref<1x24x16xf32, #tpu.memory_space<vmem>>, vector<1x24x16xf32>
    %21 = vector.shape_cast %20 : vector<1x24x16xf32> to vector<24x16xf32>
    %22 = vector.shape_cast %19 : vector<24x16xf32> to vector<1x24x16xf32>
    tpu.vector_store %arg6[%c0_10, %c0_11, %c0_12], %22 {strides = array<i32>} : memref<1x24x16xf32, #tpu.memory_space<vmem>>, vector<1x24x16xf32>,
    return
  }
  func.func @transform_0(%arg0: i32, %arg1: i32) -> (i32, i32, i32, i32) {
    %c0_i32 = arith.constant 0 : i32
    %c0_i32_0 = arith.constant 0 : i32
    %c0_i32_1 = arith.constant 0 : i32
    return %arg0, %arg1, %c0_i32, %c0_i32_0 : i32, i32, i32, i32
  }
  func.func @transform_1(%arg0: i32, %arg1: i32) -> (i32, i32) {
    %c0_i32 = arith.constant 0 : i32
    %c0_i32_0 = arith.constant 0 : i32
    %c0_i32_1 = arith.constant 0 : i32
    return %c0_i32, %c0_i32_0 : i32, i32
  }
  func.func @transform_2(%arg0: i32, %arg1: i32) -> (i32, i32) {
    %c0_i32 = arith.constant 0 : i32
    %c0_i32_0 = arith.constant 0 : i32
    %c0_i32_1 = arith.constant 0 : i32
    return %c0_i32, %c0_i32_0 : i32, i32
  }
  func.func @transform_3(%arg0: i32, %arg1: i32) -> (i32, i32) {
    %c0_i32 = arith.constant 0 : i32
    %c0_i32_0 = arith.constant 0 : i32
    %c0_i32_1 = arith.constant 0 : i32
    return %c0_i32, %c0_i32_0 : i32, i32
  }
  func.func @transform_4(%arg0: i32, %arg1: i32) -> (i32, i32, i32) {
    %c0_i32 = arith.constant 0 : i32
    %c0_i32_0 = arith.constant 0 : i32
    return %arg0, %c0_i32, %arg1 : i32, i32, i32
  }
}

</mosaic_0001>

<bundles_post_ra>
// kernel: tpu_custom_call.1
= control target key start
LH: loop header
LB: loop body
LE: loop exit
PB: predicated region body
PF: predicated region fallthrough
CT: control target
= control target key end

     0   :  { %s592_s15 = smov 0   ;;  %s594_s16 = smov 0   ;;  %s655_s0 = inlined_call_operand.vmem [shape: bf16[2,1,4,22], index: 0, kind: input, shape index: {}]   ;;  %s656_s1 = inlined_call_operand.vmem [shape: bf16[24,28], index: 1, kind: input, shape index: {}]   ;;  %s657_s2 = inlined_call_operand.vmem [shape: f32[24,1], index: 2, kind: input, shape index: {}]   ;;  %s658_s3 = inlined_call_operand.vmem [shape: f32[24,1], index: 3, kind: input, shape index: {}]   ;;  %s659_s4 = inlined_call_operand.vmem [shape: f32[2,24,16], index: 4, kind: output, shape index: {}]  }
   0x1   :  { %s596_s17 = smov 0  }
   0x2 LB: > { %s26_s18 = sadd.s32 1, %s553_s16  ;;  %p475_p0 = scmp.ge.s32.totalorder %s557_s17, 1  ;;  %s557_s17 = sphi %s596_s17, %s14_s17   ;;  %s553_s16 = sphi %s594_s16, %s661_s16   ;;  %s549_s15 = sphi %s592_s15, %s660_s15  }
   0x3   : > { %p28_p1 = scmp.ge.s32.totalorder %s26_s18, 2  ;;  %p180_p2 = scmp.lt.s32.totalorder %s557_s17, 3 }
   0x5   : > { %s663_s18 = smov (%p28_p1, %s26_s18), 0  ;;  %p181_p3 = pnand %p475_p0, %p180_p2 }
   0x6   : > { %p211_p4 = scmp.lt.s32.totalorder (!%p181_p3), %s549_s15, 1  ;;  %s560_s25 = smov (!%p181_p3), 124  }
   0x7   : > { %184 = sbr.rel (%p181_p3) target bundleno = 357 (0x165), region = 36  ;;  %s561_s26 = smov (!%p181_p3), 122  }
   0x8   : > { %s563_s27 = smov (!%p181_p3), 123   ;;  %s564_s28 = smov (!%p181_p3), 127  }
   0x9   : > { %s565_s29 = smov (!%p181_p3), 126   ;;  %s566_s6 = smov (!%p181_p3), 125  }
   0xc   : > { %v233_v0 = vlaneseq  ;;  %v559_v1 = vmov 1983009808   ;;  %s665_s15 = smov (!%p211_p4, %s549_s15), 1  ;;  %v533_v9 = vld [vmem:[%s656_s1] sm:$0xff]   ;;  %vm285_vm0 = vcmask 228352   ;;  %v562_v12 = vmov 0  }
   0xd   : > { %v231_v2 = vunpack.c.l.s4 %v559_v1  ;;  %s476_s19 = sshll.u32 %s665_s15, 1  ;;  %492 = vmatprep.mubr.msk.bf16.mxu0 %vm285_vm0, %v533_v9  ;;  %531 = vset.pattern.permute.xlu1 %v562_v12  ;;  %v342_v14 = vld [vmem:[%s657_s2] sm:$0xff]  ;;  %v343_v15 = vld [vmem:[%s657_s2 + $0x8] sm:$0xff]  ;;  %v344_v17 = vld [vmem:[%s657_s2 + $0x10] sm:$0xff]  ;;  %vm258_vm1 = vcmask 1041408   ;;  %vm262_vm2 = vcmask 1043456  }
   0xe   : > { %v234_v3 = vshrl.u32 %v233_v0, 7  ;;  %s217_s22 = scalar_lea.vmem %s655_s0, %s476_s19  ;;  %530 = vset.pattern.permute.xlu0 %v562_v12  ;;  %v363_v16 = vld [vmem:[%s658_s3] sm:$0xff]  ;;  %v365_v18 = vld [vmem:[%s658_s3 + $0x10] sm:$0xff]  ;;  %v364_v19 = vld [vmem:[%s658_s3 + $0x8] sm:$0xff]  ;;  %vm265_vm3 = vcmask 1045504   ;;  %s497_s23 = smul.u32 24, %s665_s15 }
   0xf   : > { %v232_v4 = vunpack.c.0.s8 %v231_v2  ;;  %v227_v6 = vld [vmem:[%s217_s22] sm:$0x3]  ;;  %v534_v32 = vld [vmem:[%s656_s1 + $0x8] ss:$0 sps:$4 sm:$0xff]   ;;  %vm387_vm4 = vcmask 130048  }
  0x10   : > { %v229_v8 = vcombine.low %v227_v6, %v227_v6 }
  0x11   : > { %v235_v5 = vsub.s32 %v232_v4, %v234_v3 }
  0x13   : > { %v243_v7 = vrot.slane %v227_v6, %v235_v5  ;;  %v236_v11 = vrot.slane %v229_v8, %v235_v5 }
  0x15   : > { %252 = vrot.lane.b32.xlu0 %v243_v7, %s560_s25  ;;  %v246_v10 = vcombine.low %v243_v7, %v243_v7  ;;  %v249_v13 = vcombine.low %v236_v11, %v236_v11 }
  0x17   : > { %256 = vrot.lane.b32.xlu1 %v246_v10, %s561_s26  ;;  %s225_s26 = scalar_lea.vmem %s659_s4, %s497_s23 }
  0x19   : > { %254 = vrot.lane.b32.xlu0 %v236_v11, %s563_s27 }
  0x1b   : > { %244 = vrot.lane.b32.xlu1 %v236_v11, %s564_s28 }
  0x1d   : > { %247 = vrot.lane.b32.xlu0 %v246_v10, %s565_s29 }
  0x1f   : > { %250 = vrot.lane.b32.xlu1 %v249_v13, %s566_s6 }
  0x21   : > { %347 = vperm.xlu0 %530, %v342_v14  }
  0x23   : > { %352 = vperm.xlu1 %531, %v343_v15  }
  0x25   : > { %368 = vperm.xlu0 %530, %v363_v16  }
  0x27   : > { %357 = vperm.xlu1 %531, %v344_v17  }
  0x29   : > { %378 = vperm.xlu0 %530, %v365_v18  }
  0x2b   : > { %373 = vperm.xlu1 %531, %v364_v19  }
  0x87   : > { %v253_v20 = vpop.permute.xlu0 %252 }
  0x89   : > { %v257_v21 = vpop.permute.xlu1 %256 }
  0x8b   : > { %v255_v22 = vpop.permute.xlu0 %254 }
  0x8c   : > { %v271_v23 = vsel %vm258_vm1, %v253_v20, %v255_v22 }
  0x8d   : > { %v245_v24 = vpop.permute.xlu1 %244  ;;  %v273_v25 = vsel %vm262_vm2, %v271_v23, %v257_v21 }
  0x8e   : > { %v261_v26 = vsel %vm258_vm1, %v227_v6, %v245_v24  ;;  %496 = vmatprep.subr.msk.bf16.mxu0 %vm265_vm3, %v273_v25  ;;  %v292_v27 = vsel %vm265_vm3, %v273_v25, 0 }
  0x8f   : > { %489 = vmatpush3.bf16.msra.mxu0 %v292_v27  ;;  %v248_v28 = vpop.permute.xlu0 %247 }
  0x90   : > { %v264_v29 = vsel %vm262_vm2, %v261_v26, %v248_v28 }
  0x91   : > { %v251_v30 = vpop.permute.xlu1 %250 }
  0x92   : > { %v267_v31 = vsel %vm265_vm3, %v264_v29, %v251_v30 }
  0x93   : > { %490 = vmatprep.subr.bf16.mxu0 %v267_v31 }
  0x94   : > { %491 = vmatpush3.bf16.msra.mxu0 %v267_v31 }
  0x97   : > { %493 = vmatmul.mubr.msk.bf16.vlgmr.msra.gmra.mxu0 %vm285_vm0, %v534_v32 }
  0x9c   : > { %v348_v33 = vpop.permute.xlu0 %347 }
  0x9e   : > { %v353_v34 = vpop.permute.xlu1 %352 }
  0xa0   : > { %v369_v35 = vpop.permute.xlu0 %368 }
  0xa2   : > { %v358_v36 = vpop.permute.xlu1 %357 }
  0xa4   : > { %v379_v39 = vpop.permute.xlu0 %378 }
  0xa6   : > { %v374_v49 = vpop.permute.xlu1 %373 }
 0x157   : > { %v494_v37 = vpop.f32.mrf.mxu0 }
 0x158   : > { %v362_v38 = vmul.f32 %v494_v37, %v358_v36 }
 0x159   : > { %v328_v40 = vpop.f32.mrf.mxu0 }
 0x15a   : > { %v383_v41 = vadd.f32 %v379_v39, %v362_v38  ;;  %v360_v42 = vmul.f32 %v348_v33, %v328_v40 }
 0x15b   : > { %v495_v43 = vpop.f32.mrf.mxu0 }
 0x15c   : > { %v386_v44 = vmax.f32 %v383_v41, 0.0  ;;  %v381_v45 = vadd.f32 %v369_v35, %v360_v42 }
 0x15d   : > { %v331_v46 = vpop.f32.mrf.mxu0 }
 0x15e   : > { %390 = vst.msk [vmem:[%s225_s26 + $0x10] sm:$0xff] %vm387_vm4, %v386_v44  ;;  %v384_v47 = vmax.f32 %v381_v45, 0.0  ;;  %v361_v48 = vmul.f32 %v353_v34, %v331_v46 }
 0x160   : > { %388 = vst.msk [vmem:[%s225_s26] sm:$0xff] %vm387_vm4, %v384_v47  ;;  %v382_v50 = vadd.f32 %v374_v49, %v361_v48 }
 0x162   : > { %v385_v51 = vmax.f32 %v382_v50, 0.0 }
 0x164   : > { %389 = vst.msk [vmem:[%s225_s26 + $0x8] sm:$0xff] %vm387_vm4, %v385_v51 }
 0x165 PF: > { %s14_s17 = sadd.s32 1, %s557_s17   ;;  %s660_s15 = smov %s553_s16 }
 0x166   : > { %p11_p5 = scmp.ge.s32.totalorder %s14_s17, 4   ;;  %s661_s16 = smov %s663_s18 }
 0x168   :  { %13 = sbr.rel (!%p11_p5) target bundleno = 2 (0x2), region = 66 }

</bundles_post_ra>
